<compile_context>
chip_gen: v7x
topology: tpu7x:2x2x1
jax: 0.10.0
libtpu: 0.0.40
codegen_flags: <defaults>
</compile_context>

<pallas_src>
import jax
import jax.numpy as jnp
import numpy as np
from jax.experimental import pallas as pl
from jax.experimental.pallas import tpu as pltpu

NEG_SLOPE = 0.01   # nn.LeakyReLU default
LANE = 128
SUBLANE = 8


# ----------------------------- kernel bodies --------------------------------

def _san_compute(qp, v, wvT, wxT, bx, out_dtype):
    # 1x1 conv, no bias: Wv^T @ v -> (M, L); bf16 MXU inputs, f32 accumulation.
    x = jnp.dot(wvT, v, preferred_element_type=jnp.float32)
    # tile q over spatial positions + LeakyReLU, kept in the f32 accumulator.
    x = x + qp                                   # (M,1) or (M,L) broadcast
    x = jnp.where(x >= 0, x, NEG_SLOPE * x)
    # 1x1 conv with bias: explicit bf16 operands (accuracy already bf16-bounded
    # by the first dot), f32 accumulation, bias added in f32.
    out = jnp.dot(wxT, x.astype(wxT.dtype), preferred_element_type=jnp.float32)
    out = out + bx
    return out.astype(out_dtype)


def _san_kernel_batched(qp_ref, v_ref, wvT_ref, wxT_ref, bx_ref, o_ref):
    # qp: (1,M,1) f32, v: (1,Cv,Pt) bf16, wvT: (M,Cv) bf16, wxT: (Gp,M) bf16,
    # bx: (Gp,1) f32, o: (1,Gp,Pt)
    o_ref[0] = _san_compute(qp_ref[0], v_ref[0], wvT_ref[...], wxT_ref[...],
                            bx_ref[...], o_ref.dtype)


def _san_kernel_folded(qp_ref, v_ref, wvT_ref, wxT_ref, bx_ref, o_ref):
    # qp: (M,Lt) f32, v: (Cv,Lt) bf16, o: (Gp,Lt)   (batch folded into lanes)
    o_ref[...] = _san_compute(qp_ref[...], v_ref[...], wvT_ref[...], wxT_ref[...],
                              bx_ref[...], o_ref.dtype)


# ----------------------------- tiling helpers -------------------------------

def _vmem_budget():
    """Generation-aware (vmem_limit_bytes, max lane tile)."""
    try:
        cap = int(pltpu.get_tpu_info().vmem_capacity_bytes)
    except Exception:  # be conservative if the query is unavailable
        cap = 64 * 1024 * 1024
    if cap <= 64 * 1024 * 1024:            # v7x-class: 64 MiB per TensorCore
        return 48 * 1024 * 1024, 1024
    return 96 * 1024 * 1024, 2048          # v5e / v6e: 128 MiB


def _pick_lane_tile(l_pad, cv, m, gp, out_bytes, q_bytes_per_lane, vmem_limit, tile_cap):
    """Largest multiple-of-128 divisor of l_pad that fits the per-step VMEM budget."""
    budget = (vmem_limit * 3) // 5          # headroom for compiler scratch / regalloc
    resident = m * cv * 2 + gp * m * 2 + gp * 4          # single-buffered weights

    def usage(t):
        return (resident
                + 2 * cv * t * 2            # double-buffered v block (bf16)
                + 2 * q_bytes_per_lane * t  # double-buffered q block (folded path only)
                + 2 * gp * t * out_bytes    # double-buffered output block
                + 2 * m * t * 4)            # f32 intermediates (v_proj, x)

    k = l_pad // LANE
    best = LANE
    for d in range(1, k + 1):
        if k % d:
            continue
        t = LANE * d
        if t <= tile_cap and usage(t) <= budget:
            best = t
    return best


# ------------------------------- wrapper -------------------------------------

def san_attention(v_nchw, q, params, *, compute_dtype=jnp.bfloat16):
    """v_nchw: (N, Cv, H, W), q: (N, Cq). Returns (N, G, H, W) like the torch module."""
    wv, wq, bq, wx, bx = params
    N, Cv, H, W = v_nchw.shape
    P = H * W
    Cq, M = wq.shape
    G = wx.shape[1]
    Gp = ((G + SUBLANE - 1) // SUBLANE) * SUBLANE        # sublane-dense output stores
    out_dtype = v_nchw.dtype
    out_bytes = np.dtype(out_dtype).itemsize

    vmem_limit, tile_cap = _vmem_budget()

    # Hoisted (tiny) q projection in f32.
    q_proj = (q @ wq + bq).astype(jnp.float32)           # (N, M)

    # Small weights: pre-transposed, G padded to Gp, cast host-side.
    wvT = wv.T.astype(compute_dtype)                                            # (M, Cv)
    wxT_p = jnp.zeros((Gp, M), compute_dtype).at[:G].set(wx.T.astype(compute_dtype))
    bx_p = jnp.zeros((Gp, 1), jnp.float32).at[:G].set(bx.reshape(G, 1).astype(jnp.float32))

    # Constant-index weight blocks: single-buffered (no second VMEM copy needed).
    weight_specs = [
        pl.BlockSpec((M, Cv), lambda *_: (0, 0), pipeline_mode=pl.Buffered(1)),
        pl.BlockSpec((Gp, M), lambda *_: (0, 0), pipeline_mode=pl.Buffered(1)),
        pl.BlockSpec((Gp, 1), lambda *_: (0, 0), pipeline_mode=pl.Buffered(1)),
    ]

    if P < LANE:
        # ---- tiny-map path: fold batch into the lane axis -----------------------
        L = N * P
        L_pad = ((L + LANE - 1) // LANE) * LANE
        # (N,Cv,P) -> (Cv, N*P): small tensor, cheap HBM transpose; pad lanes with zeros.
        v_arg = jnp.transpose(v_nchw.reshape(N, Cv, P), (1, 0, 2)).reshape(Cv, L)
        v_arg = jnp.pad(v_arg.astype(compute_dtype), ((0, 0), (0, L_pad - L)))
        # q broadcast over the spatial lanes of its own batch element.
        q_arg = jnp.broadcast_to(q_proj.T[:, :, None], (M, N, P)).reshape(M, L)
        q_arg = jnp.pad(q_arg, ((0, 0), (0, L_pad - L)))

        Lt = _pick_lane_tile(L_pad, Cv, M, Gp, out_bytes, M * 4, vmem_limit, tile_cap)
        n_lt = L_pad // Lt
        grid = (n_lt,)
        in_specs = [
            pl.BlockSpec((M, Lt), lambda l: (0, l)),
            pl.BlockSpec((Cv, Lt), lambda l: (0, l)),
        ] + weight_specs
        out_specs = pl.BlockSpec((Gp, Lt), lambda l: (0, l))
        out_shape = jax.ShapeDtypeStruct((Gp, L_pad), out_dtype)
        kernel = _san_kernel_folded
        dims = ("parallel",)
        total_lanes = L_pad
    else:
        # ---- batched path: grid over (batch, spatial tiles) ---------------------
        P_pad = ((P + LANE - 1) // LANE) * LANE
        v_arg = jnp.pad(v_nchw.reshape(N, Cv, P).astype(compute_dtype),
                        ((0, 0), (0, 0), (0, P_pad - P)))
        q_arg = q_proj.reshape(N, M, 1)

        Pt = _pick_lane_tile(P_pad, Cv, M, Gp, out_bytes, 0, vmem_limit, tile_cap)
        n_pt = P_pad // Pt
        # Keep >= 2 parallel grid iterations when possible (2-TC chips).
        if N * n_pt < 2 and P_pad // LANE >= 2:
            k = P_pad // LANE
            for d in range(k // 2, 0, -1):
                if k % d == 0 and LANE * d < Pt:
                    Pt = LANE * d
                    break
            n_pt = P_pad // Pt

        grid = (N, n_pt)
        in_specs = [
            pl.BlockSpec((1, M, 1), lambda b, p: (b, 0, 0)),
            pl.BlockSpec((1, Cv, Pt), lambda b, p: (b, 0, p)),
        ] + weight_specs
        out_specs = pl.BlockSpec((1, Gp, Pt), lambda b, p: (b, 0, p))
        out_shape = jax.ShapeDtypeStruct((N, Gp, P_pad), out_dtype)
        kernel = _san_kernel_batched
        dims = ("parallel", "parallel")
        total_lanes = N * P_pad

    cost = pl.CostEstimate(
        flops=2 * total_lanes * (Cv * M + M * Gp),
        transcendentals=0,
        bytes_accessed=(total_lanes * Cv * np.dtype(compute_dtype).itemsize
                        + total_lanes * Gp * out_bytes
                        + int(np.prod(q_arg.shape)) * 4
                        + M * Cv * 2 + Gp * M * 2 + Gp * 4))

    out = pl.pallas_call(
        kernel,
        out_shape=out_shape,
        grid_spec=pltpu.PrefetchScalarGridSpec(
            num_scalar_prefetch=0,
            grid=grid,
            in_specs=in_specs,
            out_specs=out_specs),
        compiler_params=pltpu.CompilerParams(
            dimension_semantics=dims,
            vmem_limit_bytes=vmem_limit),
        cost_estimate=cost,
    )(q_arg, v_arg, wvT, wxT_p, bx_p)

    if P < LANE:
        # (Gp, L_pad) -> (N, G, H, W)
        out = out[:G, :N * P].reshape(G, N, P)
        out = jnp.transpose(out, (1, 0, 2)).reshape(N, G, H, W)
    else:
        # (N, Gp, P_pad) -> (N, G, H, W)
        out = out[:, :G, :P].reshape(N, G, H, W)
    return out


# ------------------------------ reference ------------------------------------

def reference(v_nchw, q, params):
    """Plain-JAX f32 reference matching the torch semantics (drop=0.0)."""
    wv, wq, bq, wx, bx = params
    hp = jax.lax.Precision.HIGHEST
    v_proj = jnp.einsum('nchw,cm->nmhw', v_nchw, wv, precision=hp)
    q_proj = jnp.dot(q, wq, precision=hp) + bq                       # (N, M)
    x = v_proj + q_proj[:, :, None, None]
    x = jnp.where(x >= 0, x, NEG_SLOPE * x)
    out = jnp.einsum('nmhw,mg->nghw', x, wx, precision=hp) + bx.reshape(1, -1, 1, 1)
    return out


# --------------------------------- test ---------------------------------------

def _make_case(key, N, Cv, H, W, Cq, M, G):
    kv, kq, k1, k2, k3, k4, k5 = jax.random.split(key, 7)
    v = jax.random.normal(kv, (N, Cv, H, W), dtype=jnp.float32)
    q = jax.random.normal(kq, (N, Cq), dtype=jnp.float32)
    wv = jax.random.uniform(k1, (Cv, M), jnp.float32, -1.0 / np.sqrt(Cv), 1.0 / np.sqrt(Cv))
    wq = jax.random.uniform(k2, (Cq, M), jnp.float32, -1.0 / np.sqrt(Cq), 1.0 / np.sqrt(Cq))
    bq = jax.random.uniform(k3, (1, M), jnp.float32, -1.0 / np.sqrt(Cq), 1.0 / np.sqrt(Cq))
    wx = jax.random.uniform(k4, (M, G), jnp.float32, -1.0 / np.sqrt(M), 1.0 / np.sqrt(M))
    bx = jax.random.uniform(k5, (1, G), jnp.float32, -1.0 / np.sqrt(M), 1.0 / np.sqrt(M))
    return v, q, (wv, wq, bq, wx, bx)


if __name__ == "__main__":
    key = jax.random.PRNGKey(0)
    k_a, k_b = jax.random.split(key)

    # Case 1: tiny 8x8 map (P=64 < 128) -> folded batch-into-lanes path.
    v1, q1, p1 = _make_case(k_a, N=2, Cv=32, H=8, W=8, Cq=24, M=32, G=2)
    out1 = jax.block_until_ready(san_attention(v1, q1, p1))
    ref1 = reference(v1, q1, p1)
    assert out1.shape == (2, 2, 8, 8), out1.shape
    np.testing.assert_allclose(np.asarray(out1), np.asarray(ref1), rtol=2e-2, atol=2e-2)

    # Case 2: 14x14 map (P=196 -> padded to 256 lanes) -> batched lane-tiled path.
    v2, q2, p2 = _make_case(k_b, N=2, Cv=32, H=14, W=14, Cq=24, M=32, G=2)
    out2 = jax.block_until_ready(san_attention(v2, q2, p2))
    ref2 = reference(v2, q2, p2)
    assert out2.shape == (2, 2, 14, 14), out2.shape
    np.testing.assert_allclose(np.asarray(out2), np.asarray(ref2), rtol=2e-2, atol=2e-2)

    # Tolerance accounts for bf16 MXU inputs on both dots (f32 accumulation).
    print("KERNEL_OK")
</pallas_src>

<mosaic_0001>
module attributes {stable_mosaic.version = 11 : i64} {
  func.func @_san_kernel_folded(%arg0: i32, %arg1: memref<32x128xf32, #tpu.memory_space<vmem>>, %arg2: memref<32x128xbf16, #tpu.memory_space<vmem>>, %arg3: memref<32x32xbf16, #tpu.memory_space<vmem>>, %arg4: memref<8x32xbf16, #tpu.memory_space<vmem>>, %arg5: memref<8x1xf32, #tpu.memory_space<vmem>>, %arg6: memref<8x128xf32, #tpu.memory_space<vmem>>) attributes {dimension_semantics = [#tpu.dimension_semantics<parallel>], iteration_bounds = array<i64: 1>, scalar_prefetch = 0 : i64, scratch_operands = 0 : i64, tpu.core_type = #tpu.core_type<tc>, window_params = [{transform_indices = @transform_0, window_bounds = array<i64: 32, 128>}, {transform_indices = @transform_1, window_bounds = array<i64: 32, 128>}, {pipeline_mode = #tpu.pipeline_mode<synchronous>, transform_indices = @transform_2, window_bounds = array<i64: 32, 32>}, {pipeline_mode = #tpu.pipeline_mode<synchronous>, transform_indices = @transform_3, window_bounds = array<i64: 8, 32>}, {pipeline_mode = #tpu.pipeline_mode<synchronous>, transform_indices = @transform_4, window_bounds = array<i64: 8, 1>}, {transform_indices = @transform_5, window_bounds = array<i64: 8, 128>}]} {
    %c0 = arith.constant 0 : index
    %c0_0 = arith.constant 0 : index
    %0 = vector.load %arg1[%c0, %c0_0] : memref<32x128xf32, #tpu.memory_space<vmem>>, vector<32x128xf32>
    %c0_1 = arith.constant 0 : index
    %c0_2 = arith.constant 0 : index
    %1 = vector.load %arg2[%c0_1, %c0_2] : memref<32x128xbf16, #tpu.memory_space<vmem>>, vector<32x128xbf16>
    %c0_3 = arith.constant 0 : index
    %c0_4 = arith.constant 0 : index
    %2 = vector.load %arg3[%c0_3, %c0_4] : memref<32x32xbf16, #tpu.memory_space<vmem>>, vector<32x32xbf16>
    %c0_5 = arith.constant 0 : index
    %c0_6 = arith.constant 0 : index
    %3 = vector.load %arg4[%c0_5, %c0_6] : memref<8x32xbf16, #tpu.memory_space<vmem>>, vector<8x32xbf16>
    %c0_7 = arith.constant 0 : index
    %c0_8 = arith.constant 0 : index
    %4 = vector.load %arg5[%c0_7, %c0_8] : memref<8x1xf32, #tpu.memory_space<vmem>>, vector<8x1xf32>
    %cst = arith.constant dense<0.000000e+00> : vector<32x128xf32>
    %5 = tpu.matmul %2, %1, %cst {dimension_numbers = #tpu.dot_dimension_numbers<[1], [0], [0], [1], [0, 0, 1, 1], [], []>} : vector<32x32xbf16>, vector<32x128xbf16>, vector<32x128xf32> -> vector<32x128xf32>
    %6 = arith.addf %5, %0 : vector<32x128xf32>
    %cst_9 = arith.constant 0.000000e+00 : f32
    %7 = vector.broadcast %cst_9 : f32 to vector<32x128xf32>
    %8 = arith.cmpf oge, %6, %7 : vector<32x128xf32>
    %cst_10 = arith.constant 0.00999999977 : f32
    %9 = vector.broadcast %cst_10 : f32 to vector<32x128xf32>
    %10 = arith.mulf %9, %6 : vector<32x128xf32>
    %11 = arith.select %8, %6, %10 : vector<32x128xi1>, vector<32x128xf32>
    %12 = arith.truncf %11 : vector<32x128xf32> to vector<32x128xbf16>
    %cst_11 = arith.constant dense<0.000000e+00> : vector<8x128xf32>
    %13 = tpu.matmul %3, %12, %cst_11 {dimension_numbers = #tpu.dot_dimension_numbers<[1], [0], [0], [1], [0, 0, 1, 1], [], []>} : vector<8x32xbf16>, vector<32x128xbf16>, vector<8x128xf32> -> vector<8x128xf32>
    %14 = vector.broadcast %4 : vector<8x1xf32> to vector<8x128xf32>
    %15 = arith.addf %13, %14 : vector<8x128xf32>
    %c0_12 = arith.constant 0 : index
    %c0_13 = arith.constant 0 : index
    %16 = vector.load %arg6[%c0_12, %c0_13] : memref<8x128xf32, #tpu.memory_space<vmem>>, vector<8x128xf32>
    tpu.vector_store %arg6[%c0_12, %c0_13], %15 {strides = array<i32>} : memref<8x128xf32, #tpu.memory_space<vmem>>, vector<8x128xf32>,
    return
  }
  func.func @transform_0(%arg0: i32) -> (i32, i32) {
    %c0_i32 = arith.constant 0 : i32
    %c0_i32_0 = arith.constant 0 : i32
    return %c0_i32, %arg0 : i32, i32
  }
  func.func @transform_1(%arg0: i32) -> (i32, i32) {
    %c0_i32 = arith.constant 0 : i32
    %c0_i32_0 = arith.constant 0 : i32
    return %c0_i32, %arg0 : i32, i32
  }
  func.func @transform_2(%arg0: i32) -> (i32, i32) {
    %c0_i32 = arith.constant 0 : i32
    %c0_i32_0 = arith.constant 0 : i32
    %c0_i32_1 = arith.constant 0 : i32
    return %c0_i32, %c0_i32_0 : i32, i32
  }
  func.func @transform_3(%arg0: i32) -> (i32, i32) {
    %c0_i32 = arith.constant 0 : i32
    %c0_i32_0 = arith.constant 0 : i32
    %c0_i32_1 = arith.constant 0 : i32
    return %c0_i32, %c0_i32_0 : i32, i32
  }
  func.func @transform_4(%arg0: i32) -> (i32, i32) {
    %c0_i32 = arith.constant 0 : i32
    %c0_i32_0 = arith.constant 0 : i32
    %c0_i32_1 = arith.constant 0 : i32
    return %c0_i32, %c0_i32_0 : i32, i32
  }
  func.func @transform_5(%arg0: i32) -> (i32, i32) {
    %c0_i32 = arith.constant 0 : i32
    %c0_i32_0 = arith.constant 0 : i32
    return %c0_i32, %arg0 : i32, i32
  }
}

</mosaic_0001>

<bundles_post_ra>
// kernel: tpu_custom_call.1
= control target key start
LH: loop header
LB: loop body
LE: loop exit
PB: predicated region body
PF: predicated region fallthrough
CT: control target
= control target key end

     0   :  { %10 = vsyncpa [#allocation3], 0  ;;  %s429_s0 = inlined_call_operand.hbm [shape: f32[32,128], index: 0, kind: input, shape index: {}]   ;;  %s430_s1 = inlined_call_operand.hbm [shape: bf16[32,128], index: 1, kind: input, shape index: {}]   ;;  %s431_s2 = inlined_call_operand.vmem [shape: bf16[32,32], index: 2, kind: input, shape index: {}]   ;;  %s432_s3 = inlined_call_operand.vmem [shape: bf16[8,32], index: 3, kind: input, shape index: {}]   ;;  %s433_s4 = inlined_call_operand.vmem [shape: f32[8,1], index: 4, kind: input, shape index: {}]   ;;  %s434_s5 = inlined_call_operand.hbm [shape: f32[8,128], index: 5, kind: output, shape index: {}]  }
   0x1   :  { %11 = vsyncpa [#allocation6], 0 }
   0x2   :  { %12 = vsyncpa [#allocation4], 0  ;;  %s338_s18 = smov [#allocation2]   ;;  %s266_s22 = scalar_lea.hbm %s429_s0, 512 }
   0x3   :  { %s18_s19 = sshll.u32 %s338_s18, 4  ;;  %p267_p0 = scmp.ne.s32.totalorder %s429_s0, %s266_s22  ;;  %s19_s19 = int_to_ptr.vmem [resolvable:$true] %s18_s19 }
   0x4   :  { %p270_p1 = scmp.lt.u32.totalorder %s266_s22, %s429_s0 }
   0x6   :  { %p272_p2 = pnand %p270_p1, %p267_p0 }
   0x8   :  { %275 = shalt.err (!%p272_p2)
}
   0x9   :  { %s276_s27 = scalar_lea.vmem %s19_s19, 512  ;;  %p281_p4 = scmp.lt.s32.totalorder %s19_s19, %s19_s19 }
   0xa   :  { %p277_p3 = scmp.ne.s32.totalorder %s19_s19, %s276_s27  ;;  %p282_p5 = scmp.lt.s32.totalorder %s276_s27, %s276_s27 }
   0xc   :  { %p283_p6 = por %p282_p5, %p281_p4 }
   0xe   :  { %p284_p7 = pnand %p283_p6, %p277_p3 }
  0x10   :  { %287 = shalt.err (!%p284_p7)
}
  0x11   :  { %s339_s28 = smov 128   ;;  %s340_s29 = smov 8  }
  0x12   :  { %24 = dma.hbm_to_vmem [thread:$0]  %s429_s0, 512, %s19_s19, [#allocation3], %s339_s28, %s339_s28, %s340_s29  }
  0x13   :  { %s341_s7 = smov [#allocation5]   ;;  %s288_s11 = scalar_lea.hbm %s430_s1, 256 }
  0x14   :  { %s30_s8 = sshll.u32 %s341_s7, 4  ;;  %p289_p8 = scmp.ne.s32.totalorder %s430_s1, %s288_s11  ;;  %s31_s8 = int_to_ptr.vmem [resolvable:$true] %s30_s8 }
  0x15   :  { %p292_p9 = scmp.lt.u32.totalorder %s288_s11, %s430_s1 }
  0x17   :  { %p294_p10 = pnand %p292_p9, %p289_p8 }
  0x19   :  { %297 = shalt.err (!%p294_p10)
}
  0x1a   :  { %s298_s16 = scalar_lea.vmem %s31_s8, 256  ;;  %p303_p12 = scmp.lt.s32.totalorder %s31_s8, %s31_s8 }
  0x1b   :  { %p299_p11 = scmp.ne.s32.totalorder %s31_s8, %s298_s16  ;;  %p304_p13 = scmp.lt.s32.totalorder %s298_s16, %s298_s16 }
  0x1d   :  { %p305_p0 = por %p304_p13, %p303_p12 }
  0x1f   :  { %p306_p1 = pnand %p305_p0, %p299_p11 }
  0x21   :  { %309 = shalt.err (!%p306_p1)
}
  0x22   :  { %s342_s0 = smov 64   ;;  %s343_s17 = smov 4  }
  0x23   :  { %36 = dma.hbm_to_vmem [thread:$0]  %s430_s1, 256, %s31_s8, [#allocation6], %s342_s0, %s342_s0, %s343_s17  }
  0x24   :  { %332 = dma.done.wait [#allocation3], 512  }
  0x25   :  { %333 = vsyncadd [#allocation3], 4294966784 }
  0x26   :  { %334 = dma.done.wait [#allocation6], 256  }
  0x27   :  { %335 = vsyncadd [#allocation6], 4294967040  ;;  %v262_v0 = vld [vmem:[#allocation5] sm:$0xff]   ;;  %v263_v1 = vld [vmem:[#allocation5 + $0x8] sm:$0xff]   ;;  %vm86_vm0 = vcmask 261120   ;;  %v344_v4 = vmov 0.0  }
  0x28   :  { %235 = vmatprep.subr.bf16.mxu0 %v262_v0  ;;  %v264_v2 = vld [vmem:[%s431_s2] sm:$0xff]   ;;  %v265_v3 = vld [vmem:[%s431_s2 + $0x8] sm:$0xff]   ;;  %243 = vmatprep.subr.bf16.mxu1 %v344_v4  ;;  %vm345_vm1 = vmmov 0   ;;  %v346_v6 = vmov 0   ;;  %v52_v7 = vld [vmem:[#allocation2 + $0x10] sm:$0xff]  ;;  %s347_s25 = smov [#allocation7]  }
  0x29   :  { %236 = vmatpush3.bf16.msra.mxu0 %v262_v0  ;;  %239 = vmatprep.mubr.msk.bf16.mxu0 %vm86_vm0, %v264_v2  ;;  %v63_v5 = vld [vmem:[%s433_s4] sm:$0xff]  ;;  %v53_v10 = vld [vmem:[#allocation2 + $0x18] sm:$0xff]  ;;  %v51_v13 = vld [vmem:[#allocation2 + $0x8] sm:$0xff]  ;;  %s211_s26 = sshll.u32 %s347_s25, 4  ;;  %s212_s26 = int_to_ptr.vmem [resolvable:$true] %s211_s26 }
  0x2a   :  { %237 = vmatprep.subr.bf16.mxu0 %v263_v1  ;;  %247 = vmatprep.mubr.msk.bf16.mxu1 %vm345_vm1, %v344_v4  ;;  %v50_v8 = vld [vmem:[#allocation2] sm:$0xff]  ;;  %s310_s27 = scalar_lea.vmem %s212_s26, 128  ;;  %p315_p3 = scmp.lt.s32.totalorder %s212_s26, %s212_s26 }
  0x2b   :  { %261 = vset.pattern.permute.xlu0 %v346_v6  ;;  %v62_v29 = vld [vmem:[%s432_s3] sm:$0xf]  ;;  %p311_p2 = scmp.ne.s32.totalorder %s212_s26, %s310_s27  ;;  %p316_p4 = scmp.lt.s32.totalorder %s310_s27, %s310_s27 }
  0x2c   :  { %158 = vperm.xlu0 %261, %v63_v5  }
  0x2d   :  { %238 = vmatpush3.bf16.msra.mxu0 %v263_v1  ;;  %p317_p5 = por %p316_p4, %p315_p3 }
  0x2f   :  { %p318_p6 = pnand %p317_p5, %p311_p2 }
  0x30   :  { %240 = vmatmul.mubr.msk.bf16.vlgmr.msra.gmra.mrb[0].mxu0 %vm86_vm0, %v265_v3 }
  0xab   :  { %v159_v30 = vpop.permute.xlu0 %158 }
 0x103   :  { %v241_v9 = vpop.f32.mrb[0].mxu0 }
 0x104   :  { %v136_v11 = vadd.f32 %v241_v9, %v52_v7  ;;  %v127_v12 = vpop.f32.mrb[1].mxu0 }
 0x105   :  { %v128_v14 = vadd.f32 %v127_v12, %v50_v8  ;;  %v242_v15 = vpop.f32.mrb[2].mxu0 }
 0x106   :  { %v148_v16 = vmul.f32 0.01, %v136_v11  ;;  %v139_v17 = vadd.f32 %v242_v15, %v53_v10  ;;  %v130_v18 = vpop.f32.mrb[3].mxu0  ;;  %vm144_vm2 = vcmp.ge.f32.partialorder %v136_v11, 0.0 }
 0x107   :  { %v146_v19 = vmul.f32 0.01, %v128_v14  ;;  %v131_v20 = vadd.f32 %v130_v18, %v51_v13  ;;  %vm142_vm4 = vcmp.ge.f32.partialorder %v128_v14, 0.0 }
 0x108   :  { %vm145_vm3 = vcmp.ge.f32.partialorder %v139_v17, 0.0  ;;  %v149_v21 = vmul.f32 0.01, %v139_v17  ;;  %v152_v23 = vsel %vm144_vm2, %v136_v11, %v148_v16 }
 0x109   :  { %v147_v22 = vmul.f32 0.01, %v131_v20  ;;  %vm143_vm5 = vcmp.ge.f32.partialorder %v131_v20, 0.0  ;;  %v150_v25 = vsel %vm142_vm4, %v128_v14, %v146_v19 }
 0x10a   :  { %v153_v24 = vsel %vm145_vm3, %v139_v17, %v149_v21 }
 0x10b   :  { %v151_v26 = vsel %vm143_vm5, %v131_v20, %v147_v22  ;;  %v155_v27 = vpack.c.bf16 %v153_v24, %v152_v23 }
 0x10c   :  { %v154_v28 = vpack.c.bf16 %v151_v26, %v150_v25 }
 0x10e   :  { %244 = vmatpush3.bf16.msra.mxu1 %v154_v28 }
 0x10f   :  { %245 = vmatprep.subr.bf16.mxu1 %v344_v4 }
 0x112   :  { %246 = vmatpush3.bf16.msra.mxu1 %v155_v27 }
 0x115   :  { %248 = vmatmul.mubr.msk.bf16.vlgmr.msra.gmra.mrb[0].mxu1 %vm86_vm0, %v62_v29 }
 0x1e8   :  { %v198_v31 = vpop.f32.mrb[0].mxu1 }
 0x1e9   :  { %v199_v32 = vadd.f32 %v198_v31, %v159_v30  ;;  %v249_v33 = vpop.f32.mrb[1].mxu1 }
 0x1ea   :  { %v201_v34 = vpop.f32.mrb[2].mxu1 }
 0x1eb   :  { %204 = vst [vmem:[#allocation7] sm:$0xff] %v199_v32  ;;  %v250_v35 = vpop.f32.mrb[3].mxu1 }
 0x1ec   :  { %321 = shalt.err (!%p318_p6)
}
 0x1ed   :  { %s322_s29 = scalar_lea.hbm %s434_s5, 128 }
 0x1ee   :  { %p323_p7 = scmp.ne.s32.totalorder %s434_s5, %s322_s29  ;;  %p326_p8 = scmp.lt.u32.totalorder %s322_s29, %s434_s5 }
 0x1f0   :  { %p328_p9 = pnand %p326_p8, %p323_p7 }
 0x1f2   :  { %331 = shalt.err (!%p328_p9)
}
 0x1f3   :  { %214 = dma.vmem_to_hbm [thread:$0]  %s212_s26, 128, %s434_s5, [#allocation4]  }
 0x1f4   :  { %336 = dma.done.wait [#allocation4], 128  }
 0x1f5   :  { %337 = vsyncadd [#allocation4], 4294967168 }
 0x1f6   :  { %218 = vsyncpa [#allocation3], 1 }
 0x1f7   :  { %219 = vsyncpa [#allocation6], 1 }
 0x1f8   :  { %220 = vsyncpa [#allocation4], 1 }

</bundles_post_ra>
